<compile_context>
chip_gen: v7x
topology: tpu7x:2x2x1
jax: 0.10.0
libtpu: 0.0.40
codegen_flags: <defaults>
</compile_context>

<pallas_src>
import functools
from typing import NamedTuple

import jax
import jax.numpy as jnp
from jax.experimental import pallas as pl
from jax.experimental.pallas import tpu as pltpu

_LANE = 128
_SUBLANE = 8
_DEFAULT_VMEM_BUDGET = 32 * 1024 * 1024  # conservative across v5e/v6e/v7x


def _round_up(n: int, m: int) -> int:
    return ((n + m - 1) // m) * m


class ExpertParams(NamedTuple):
    w: jax.Array      # [in_pad, out_pad] bf16, zero-padded, pre-transposed
    b: jax.Array      # [1, out_pad]  f32 (zeros in padded columns)
    mask: jax.Array   # [1, out_pad]  f32 additive mask: 0 real cols, -inf padded cols
    in_dim: int
    out_dim: int
    tk: int           # K tile (== in_pad when W is fully resident)


def prepare_expert_params(weight: jax.Array, bias: jax.Array,
                          *, vmem_budget_bytes: int = _DEFAULT_VMEM_BUDGET) -> ExpertParams:
    """One-time parameter setup.

    weight: [out_dim, in_dim] (PyTorch nn.Linear layout), bias: [out_dim].
    Transposes to [in_dim, out_dim], zero-pads out_dim to a lane multiple (and
    in_dim to the K tile if W must stream), and casts W to bf16 — all once, so
    expert_forward never re-pads or re-casts the weights.
    """
    out_dim, in_dim = weight.shape
    out_pad = _round_up(out_dim, _LANE)

    # W stays fully resident in VMEM (single-buffered) if its bf16 footprint fits
    # in half the budget; otherwise it streams over K in lane-aligned tiles.
    if in_dim * out_pad * 2 <= vmem_budget_bytes // 2:
        tk = in_dim
        in_pad = in_dim
    else:
        tk = max(_LANE, min(2048, (vmem_budget_bytes // (8 * out_pad)) // _LANE * _LANE))
        in_pad = _round_up(in_dim, tk)

    w_t = jnp.transpose(weight)  # [in_dim, out_dim]
    w_p = jnp.pad(w_t, ((0, in_pad - in_dim), (0, out_pad - out_dim))).astype(jnp.bfloat16)
    b_p = jnp.pad(bias.astype(jnp.float32), (0, out_pad - out_dim)).reshape(1, out_pad)
    mask = jnp.where(jnp.arange(out_pad) < out_dim, 0.0, -jnp.inf)
    mask = mask.astype(jnp.float32).reshape(1, out_pad)
    return ExpertParams(w=w_p, b=b_p, mask=mask, in_dim=in_dim, out_dim=out_dim, tk=tk)


def _softmax_rows(z, b, neg_mask, o_ref):
    """bias + ReLU (dropout = identity at inference) + masked stable softmax."""
    z = jnp.maximum(z + b, 0.0) + neg_mask          # -inf on padded lanes -> exp == 0
    z = z - jnp.max(z, axis=-1, keepdims=True)
    e = jnp.exp(z)
    s = jnp.sum(e, axis=-1, keepdims=True)
    inv = pl.reciprocal(s, approx=True)             # EUP slot
    inv = inv * (2.0 - s * inv)                     # one Newton step: ~exact row sums
    o_ref[...] = (e * inv).astype(o_ref.dtype)


def expert_kernel_resident(x_ref, w_ref, b_ref, mask_ref, o_ref):
    # W already bf16 (cast once at setup); x cast is a no-op if x is bf16.
    z = jnp.dot(x_ref[...].astype(jnp.bfloat16), w_ref[...],
                preferred_element_type=jnp.float32)
    _softmax_rows(z, b_ref[...], mask_ref[...], o_ref)


def expert_kernel_ktiled(x_ref, w_ref, b_ref, mask_ref, o_ref, acc_ref):
    k = pl.program_id(1)

    @pl.when(k == 0)
    def _():
        acc_ref[...] = jnp.zeros_like(acc_ref)

    acc_ref[...] += jnp.dot(x_ref[...].astype(jnp.bfloat16), w_ref[...],
                            preferred_element_type=jnp.float32)

    @pl.when(k == pl.num_programs(1) - 1)
    def _():
        _softmax_rows(acc_ref[...], b_ref[...], mask_ref[...], o_ref)


def expert_forward(x: jax.Array, params: ExpertParams, *, block_b: int = 512,
                   vmem_budget_bytes: int = _DEFAULT_VMEM_BUDGET) -> jax.Array:
    """x: [B, in_dim] (f32 or bf16) -> softmax(relu(x @ W^T + b)) : [B, out_dim] f32."""
    B, in_dim = x.shape
    assert in_dim == params.in_dim, (in_dim, params.in_dim)
    in_pad, out_pad = params.w.shape
    tk = params.tk
    nk = in_pad // tk

    if in_pad != in_dim:
        # K-streamed path needs lane-aligned K blocks; zero K-padding is exact.
        # TODO(synk): have the producing layer emit K-aligned activations to avoid this copy.
        x = jnp.pad(x, ((0, 0), (0, in_pad - in_dim)))

    x_bytes = jnp.dtype(x.dtype).itemsize

    # ---- tile planning against the VMEM budget ------------------------------
    w_buffers = 1 if nk == 1 else 2                       # resident vs streamed W
    fixed = w_buffers * tk * out_pad * 2 + 2 * out_pad * 4   # W + bias + mask
    per_row = (2 * tk * x_bytes                            # x, double-buffered
               + 2 * out_pad * 4                           # out, double-buffered
               + (out_pad * 4 if nk > 1 else 0))           # f32 accumulator scratch
    avail = max(vmem_budget_bytes - fixed, per_row * _SUBLANE)
    tb_max = max(_SUBLANE, (avail // per_row) // _SUBLANE * _SUBLANE)
    tb = min(block_b, tb_max, _round_up(B, _SUBLANE))
    # Prefer >= 2 grid steps over the batch so v7x's two TensorCores engage and
    # the input/output pipeline has something to overlap.
    if B > _SUBLANE and pl.cdiv(B, tb) < 2:
        tb = max(_SUBLANE, _round_up(pl.cdiv(B, 2), _SUBLANE))
    nb = pl.cdiv(B, tb)

    vmem_est = fixed + tb * per_row
    vmem_limit = min(max(int(vmem_est * 5 // 4) + (2 << 20), 16 << 20), 64 << 20)

    if nk == 1:
        grid = (nb,)
        kernel = expert_kernel_resident
        in_specs = [
            pl.BlockSpec((tb, in_pad), lambda i: (i, 0)),                     # x streamed
            pl.BlockSpec((in_pad, out_pad), lambda i: (0, 0),
                         pipeline_mode=pl.Buffered(1)),                       # W resident, 1 buffer
            pl.BlockSpec((1, out_pad), lambda i: (0, 0),
                         pipeline_mode=pl.Buffered(1)),                       # bias resident
            pl.BlockSpec((1, out_pad), lambda i: (0, 0),
                         pipeline_mode=pl.Buffered(1)),                       # mask resident
        ]
        out_specs = pl.BlockSpec((tb, out_pad), lambda i: (i, 0))
        scratch_shapes = []
        dims = ("parallel",)
    else:
        grid = (nb, nk)                                                       # reduction axis last
        kernel = expert_kernel_ktiled
        in_specs = [
            pl.BlockSpec((tb, tk), lambda i, k: (i, k)),                      # x streamed over K
            pl.BlockSpec((tk, out_pad), lambda i, k: (k, 0)),                 # W streamed over K
            pl.BlockSpec((1, out_pad), lambda i, k: (0, 0),
                         pipeline_mode=pl.Buffered(1)),
            pl.BlockSpec((1, out_pad), lambda i, k: (0, 0),
                         pipeline_mode=pl.Buffered(1)),
        ]
        out_specs = pl.BlockSpec((tb, out_pad), lambda i, k: (i, 0))
        scratch_shapes = [pltpu.VMEM((tb, out_pad), jnp.float32)]
        dims = ("parallel", "arbitrary")

    out = pl.pallas_call(
        kernel,
        out_shape=jax.ShapeDtypeStruct((B, out_pad), jnp.float32),
        grid=grid,
        in_specs=in_specs,
        out_specs=out_specs,
        scratch_shapes=scratch_shapes,
        compiler_params=pltpu.CompilerParams(
            dimension_semantics=dims,
            vmem_limit_bytes=vmem_limit),
    )(x, params.w, params.b, params.mask)

    if out_pad == params.out_dim:
        return out          # already lane-dense: no padding, no slice copy
    # TODO(synk): for out_dim << 128 let the consumer read the padded buffer
    # directly (or fuse several experts' columns to reach N >= 256) to avoid
    # this extra HBM pass over the output.
    return out[:, :params.out_dim]


if __name__ == "__main__":
    # Small shapes consistent with the module: a batch of token vectors fed to one expert.
    B, in_dim, out_dim = 8, 32, 16

    key = jax.random.PRNGKey(0)
    kx, kw, kb = jax.random.split(key, 3)

    x = jax.random.normal(kx, (B, in_dim), dtype=jnp.float32)
    # PyTorch nn.Linear layout: weight [out_dim, in_dim], bias [out_dim].
    weight = jax.random.normal(kw, (out_dim, in_dim), dtype=jnp.float32) * 0.1
    bias = jax.random.normal(kb, (out_dim,), dtype=jnp.float32) * 0.1

    params = prepare_expert_params(weight, bias)   # one-time pad/transpose/bf16 cast
    out = expert_forward(x, params)
    jax.block_until_ready(out)

    # Pure-JAX reference of the same math (Dropout is identity in eval mode).
    ref = jax.nn.softmax(jnp.maximum(x @ weight.T + bias, 0.0), axis=-1)
    assert out.shape == (B, out_dim)
    # bf16 MXU inputs slightly loosen the elementwise tolerance.
    assert jnp.allclose(out, ref, atol=1e-2, rtol=1e-2)
    # Newton-refined reciprocal -> rows sum to 1 to ~f32 precision.
    assert jnp.allclose(jnp.sum(out, axis=-1), 1.0, atol=1e-3)

    print("KERNEL_OK")
</pallas_src>

<mosaic_0001>
module attributes {stable_mosaic.version = 11 : i64} {
  func.func @expert_kernel_resident(%arg0: i32, %arg1: memref<8x32xf32, #tpu.memory_space<vmem>>, %arg2: memref<32x128xbf16, #tpu.memory_space<vmem>>, %arg3: memref<1x128xf32, #tpu.memory_space<vmem>>, %arg4: memref<1x128xf32, #tpu.memory_space<vmem>>, %arg5: memref<8x128xf32, #tpu.memory_space<vmem>>) attributes {dimension_semantics = [#tpu.dimension_semantics<parallel>], iteration_bounds = array<i64: 1>, scalar_prefetch = 0 : i64, scratch_operands = 0 : i64, tpu.core_type = #tpu.core_type<tc>, window_params = [{transform_indices = @transform_0, window_bounds = array<i64: 8, 32>}, {pipeline_mode = #tpu.pipeline_mode<synchronous>, transform_indices = @transform_1, window_bounds = array<i64: 32, 128>}, {pipeline_mode = #tpu.pipeline_mode<synchronous>, transform_indices = @transform_2, window_bounds = array<i64: 1, 128>}, {pipeline_mode = #tpu.pipeline_mode<synchronous>, transform_indices = @transform_3, window_bounds = array<i64: 1, 128>}, {transform_indices = @transform_4, window_bounds = array<i64: 8, 128>}]} {
    %c0 = arith.constant 0 : index
    %c0_0 = arith.constant 0 : index
    %0 = vector.load %arg1[%c0, %c0_0] : memref<8x32xf32, #tpu.memory_space<vmem>>, vector<8x32xf32>
    %1 = arith.truncf %0 : vector<8x32xf32> to vector<8x32xbf16>
    %c0_1 = arith.constant 0 : index
    %c0_2 = arith.constant 0 : index
    %2 = vector.load %arg2[%c0_1, %c0_2] : memref<32x128xbf16, #tpu.memory_space<vmem>>, vector<32x128xbf16>
    %cst = arith.constant dense<0.000000e+00> : vector<8x128xf32>
    %3 = tpu.matmul %1, %2, %cst {dimension_numbers = #tpu.dot_dimension_numbers<[1], [0], [0], [1], [0, 0, 1, 1], [], []>} : vector<8x32xbf16>, vector<32x128xbf16>, vector<8x128xf32> -> vector<8x128xf32>
    %c0_3 = arith.constant 0 : index
    %c0_4 = arith.constant 0 : index
    %4 = vector.load %arg3[%c0_3, %c0_4] : memref<1x128xf32, #tpu.memory_space<vmem>>, vector<1x128xf32>
    %c0_5 = arith.constant 0 : index
    %c0_6 = arith.constant 0 : index
    %5 = vector.load %arg4[%c0_5, %c0_6] : memref<1x128xf32, #tpu.memory_space<vmem>>, vector<1x128xf32>
    %6 = vector.broadcast %4 : vector<1x128xf32> to vector<8x128xf32>
    %7 = arith.addf %3, %6 : vector<8x128xf32>
    %cst_7 = arith.constant 0.000000e+00 : f32
    %8 = vector.broadcast %cst_7 : f32 to vector<8x128xf32>
    %9 = arith.maximumf %7, %8 : vector<8x128xf32>
    %10 = vector.broadcast %5 : vector<1x128xf32> to vector<8x128xf32>
    %11 = arith.addf %9, %10 : vector<8x128xf32>
    %cst_8 = arith.constant dense<0xFF800000> : vector<8xf32>
    %12 = vector.multi_reduction <maximumf>, %11, %cst_8 [1] : vector<8x128xf32> to vector<8xf32>
    %13 = vector.shape_cast %12 : vector<8xf32> to vector<8x1xf32>
    %14 = vector.broadcast %13 : vector<8x1xf32> to vector<8x128xf32>
    %15 = arith.subf %11, %14 : vector<8x128xf32>
    %16 = math.exp %15 : vector<8x128xf32>
    %cst_9 = arith.constant dense<0.000000e+00> : vector<8xf32>
    %17 = vector.multi_reduction <add>, %16, %cst_9 [1] : vector<8x128xf32> to vector<8xf32>
    %18 = vector.shape_cast %17 : vector<8xf32> to vector<8x1xf32>
    %19 = tpu.reciprocal %18 {approx = true} : vector<8x1xf32> -> vector<8x1xf32>
    %20 = arith.mulf %18, %19 : vector<8x1xf32>
    %cst_10 = arith.constant 2.000000e+00 : f32
    %21 = vector.broadcast %cst_10 : f32 to vector<8x1xf32>
    %22 = arith.subf %21, %20 : vector<8x1xf32>
    %23 = arith.mulf %19, %22 : vector<8x1xf32>
    %24 = vector.broadcast %23 : vector<8x1xf32> to vector<8x128xf32>
    %25 = arith.mulf %16, %24 : vector<8x128xf32>
    %c0_11 = arith.constant 0 : index
    %c0_12 = arith.constant 0 : index
    %26 = vector.load %arg5[%c0_11, %c0_12] : memref<8x128xf32, #tpu.memory_space<vmem>>, vector<8x128xf32>
    tpu.vector_store %arg5[%c0_11, %c0_12], %25 {strides = array<i32>} : memref<8x128xf32, #tpu.memory_space<vmem>>, vector<8x128xf32>,
    return
  }
  func.func @transform_0(%arg0: i32) -> (i32, i32) {
    %c0_i32 = arith.constant 0 : i32
    %c0_i32_0 = arith.constant 0 : i32
    return %arg0, %c0_i32 : i32, i32
  }
  func.func @transform_1(%arg0: i32) -> (i32, i32) {
    %c0_i32 = arith.constant 0 : i32
    %c0_i32_0 = arith.constant 0 : i32
    %c0_i32_1 = arith.constant 0 : i32
    return %c0_i32, %c0_i32_0 : i32, i32
  }
  func.func @transform_2(%arg0: i32) -> (i32, i32) {
    %c0_i32 = arith.constant 0 : i32
    %c0_i32_0 = arith.constant 0 : i32
    %c0_i32_1 = arith.constant 0 : i32
    return %c0_i32, %c0_i32_0 : i32, i32
  }
  func.func @transform_3(%arg0: i32) -> (i32, i32) {
    %c0_i32 = arith.constant 0 : i32
    %c0_i32_0 = arith.constant 0 : i32
    %c0_i32_1 = arith.constant 0 : i32
    return %c0_i32, %c0_i32_0 : i32, i32
  }
  func.func @transform_4(%arg0: i32) -> (i32, i32) {
    %c0_i32 = arith.constant 0 : i32
    %c0_i32_0 = arith.constant 0 : i32
    return %arg0, %c0_i32 : i32, i32
  }
}

</mosaic_0001>

<bundles_post_ra>
// kernel: tpu_custom_call.1
= control target key start
LH: loop header
LB: loop body
LE: loop exit
PB: predicated region body
PF: predicated region fallthrough
CT: control target
= control target key end

     0   :  { %9 = vsyncpa [#allocation3], 0  ;;  %s334_s0 = inlined_call_operand.hbm [shape: f32[8,32], index: 0, kind: input, shape index: {}]   ;;  %s335_s1 = inlined_call_operand.hbm [shape: bf16[32,128], index: 1, kind: input, shape index: {}]   ;;  %s336_s2 = inlined_call_operand.vmem [shape: f32[1,128], index: 2, kind: input, shape index: {}]   ;;  %s337_s3 = inlined_call_operand.vmem [shape: f32[1,128], index: 3, kind: input, shape index: {}]   ;;  %s338_s4 = inlined_call_operand.hbm [shape: f32[8,128], index: 4, kind: output, shape index: {}]  }
   0x1   :  { %10 = vsyncpa [#allocation6], 0 }
   0x2   :  { %11 = vsyncpa [#allocation4], 0  ;;  %s253_s15 = smov [#allocation2]   ;;  %s254_s17 = smov [#allocation5]  }
   0x3   :  { %s18_s16 = sshll.u32 %s253_s15, 4  ;;  %s27_s18 = sshll.u32 %s254_s17, 4  ;;  %s19_s16 = int_to_ptr.vmem [resolvable:$true] %s18_s16  ;;  %s285_s18 = int_to_ptr.vmem [resolvable:$true] %s27_s18 }
   0x4   :  { %s181_s21 = scalar_lea.hbm %s334_s0, 128 }
   0x5   :  { %p182_p0 = scmp.ne.s32.totalorder %s334_s0, %s181_s21  ;;  %p185_p1 = scmp.lt.u32.totalorder %s181_s21, %s334_s0 }
   0x7   :  { %p187_p2 = pnand %p185_p1, %p182_p0 }
   0x9   :  { %190 = shalt.err (!%p187_p2)
}
   0xa   :  { %s191_s26 = scalar_lea.vmem %s19_s16, 128  ;;  %p196_p4 = scmp.lt.s32.totalorder %s19_s16, %s19_s16 }
   0xb   :  { %p192_p3 = scmp.ne.s32.totalorder %s19_s16, %s191_s26  ;;  %p197_p5 = scmp.lt.s32.totalorder %s191_s26, %s191_s26 }
   0xd   :  { %p198_p6 = por %p197_p5, %p196_p4 }
   0xf   :  { %p199_p7 = pnand %p198_p6, %p192_p3 }
  0x11   :  { %202 = shalt.err (!%p199_p7)
}
  0x12   :  { %21 = dma.hbm_to_vmem [thread:$0]  %s334_s0, 128, %s19_s16, [#allocation3]  }
  0x13   :  { %s203_s5 = scalar_lea.hbm %s335_s1, 256 }
  0x14   :  { %p204_p8 = scmp.ne.s32.totalorder %s335_s1, %s203_s5  ;;  %p207_p9 = scmp.lt.u32.totalorder %s203_s5, %s335_s1 }
  0x16   :  { %p209_p10 = pnand %p207_p9, %p204_p8 }
  0x18   :  { %212 = shalt.err (!%p209_p10)
}
  0x19   :  { %s213_s10 = scalar_lea.vmem %s285_s18, 256  ;;  %p218_p12 = scmp.lt.s32.totalorder %s285_s18, %s285_s18 }
  0x1a   :  { %p214_p11 = scmp.ne.s32.totalorder %s285_s18, %s213_s10  ;;  %p219_p13 = scmp.lt.s32.totalorder %s213_s10, %s213_s10 }
  0x1c   :  { %p220_p0 = por %p219_p13, %p218_p12 }
  0x1e   :  { %p221_p1 = pnand %p220_p0, %p214_p11 }
  0x20   :  { %224 = shalt.err (!%p221_p1)
}
  0x21   :  { %s255_s0 = smov 64   ;;  %s256_s11 = smov 4  }
  0x22   :  { %33 = dma.hbm_to_vmem [thread:$0]  %s335_s1, 256, %s285_s18, [#allocation6], %s255_s0, %s255_s0, %s256_s11  }
  0x23   :  { %247 = dma.done.wait [#allocation3], 128  }
  0x24   :  { %248 = vsyncadd [#allocation3], 4294967168 }
  0x25   :  { %249 = dma.done.wait [#allocation6], 256  }
  0x26   :  { %250 = vsyncadd [#allocation6], 4294967040  ;;  %v257_v0 = vmov 0.0   ;;  %vm258_vm0 = vmmov 0   ;;  %v175_v1 = vld [vmem:[#allocation5] sm:$0xff]   ;;  %v176_v2 = vld [vmem:[#allocation5 + $0x8] sm:$0xff]  }
  0x27   :  { %160 = vmatprep.subr.bf16.mxu0 %v257_v0  ;;  %164 = vmatprep.mubr.msk.bf16.mxu0 %vm258_vm0, %v257_v0  ;;  %v45_v3 = vld [vmem:[#allocation2] sm:$0xff]  ;;  %vm71_vm1 = vcmask 261120  }
  0x28   :  { %161 = vmatpush3.bf16.msra.mxu0 %v175_v1  ;;  %v46_v4 = vpack.c.bf16 %v45_v3, %v45_v3  ;;  %v152_v5 = vld [vmem:[%s336_s2] ss:$0 sm:$0xff]  ;;  %s259_s2 = smov [#allocation7]  }
  0x29   :  { %162 = vmatprep.subr.bf16.mxu0 %v257_v0  ;;  %v156_v10 = vld [vmem:[%s337_s3] ss:$0 sm:$0xff]  ;;  %s142_s17 = sshll.u32 %s259_s2, 4  ;;  %s143_s17 = int_to_ptr.vmem [resolvable:$true] %s142_s17 }
  0x2a   :  { %s225_s3 = scalar_lea.vmem %s143_s17, 128  ;;  %p230_p3 = scmp.lt.s32.totalorder %s143_s17, %s143_s17 }
  0x2b   :  { %p226_p2 = scmp.ne.s32.totalorder %s143_s17, %s225_s3  ;;  %p231_p4 = scmp.lt.s32.totalorder %s225_s3, %s225_s3 }
  0x2c   :  { %163 = vmatpush3.bf16.msra.mxu0 %v176_v2 }
  0x2d   :  { %p232_p5 = por %p231_p4, %p230_p3 }
  0x2f   :  { %165 = vmatmul.mubr.msk.bf16.vlgmr.msra.gmra.mrb[0].mxu0 %vm71_vm1, %v46_v4  ;;  %p233_p6 = pnand %p232_p5, %p226_p2 }
 0x102   :  { %v109_v6 = vpop.f32.mrb[0].mxu0 }
 0x103   :  { %v110_v7 = vadd.f32 %v152_v5, %v109_v6  ;;  %v166_v8 = vpop.f32.mrb[1].mxu0 }
 0x104   :  { %v112_v9 = vpop.f32.mrb[2].mxu0 }
 0x105   :  { %v115_v11 = vmax.f32 %v110_v7, 0.0  ;;  %v167_v12 = vpop.f32.mrb[3].mxu0 }
 0x107   :  { %v122_v13 = vadd.f32 %v156_v10, %v115_v11 }
 0x109   :  { %123 = vmax.xlane.f32.xlu0 %v122_v13 }
 0x196   :  { %v124_v14 = vpop.xlane.xlu0 %123 }
 0x197   :  { %v125_v15 = vsub.f32 %v122_v13, %v124_v14 }
 0x199   :  { %v126_v16 = vmul.f32 1.442695, %v125_v15 }
 0x19b   :  { %177 = vpow2.f32 %v126_v16 }
 0x1a5   :  { %v178_v17 = vpop.eup %177 }
 0x1a6   :  { %128 = vadd.xlane.f32.xlu0 %v178_v17 }
 0x233   :  { %v129_v18 = vpop.xlane.xlu0 %128 }
 0x234   :  { %179 = vrcp.f32 %v129_v18 }
 0x23e   :  { %v180_v19 = vpop.eup %179 }
 0x23f   :  { %v131_v20 = vmul.f32 %v180_v19, %v129_v18 }
 0x241   :  { %v132_v21 = vsub.f32 2.0, %v131_v20 }
 0x243   :  { %v133_v22 = vmul.f32 %v180_v19, %v132_v21 }
 0x245   :  { %v134_v23 = vmul.f32 %v178_v17, %v133_v22 }
 0x247   :  { %135 = vst [vmem:[#allocation7] sm:$0xff] %v134_v23 }
 0x248   :  { %236 = shalt.err (!%p233_p6)
}
 0x249   :  { %s237_s20 = scalar_lea.hbm %s338_s4, 128 }
 0x24a   :  { %p238_p7 = scmp.ne.s32.totalorder %s338_s4, %s237_s20  ;;  %p241_p8 = scmp.lt.u32.totalorder %s237_s20, %s338_s4 }
 0x24c   :  { %p243_p9 = pnand %p241_p8, %p238_p7 }
 0x24e   :  { %246 = shalt.err (!%p243_p9)
}
 0x24f   :  { %145 = dma.vmem_to_hbm [thread:$0]  %s143_s17, 128, %s338_s4, [#allocation4]  }
 0x250   :  { %251 = dma.done.wait [#allocation4], 128  }
 0x251   :  { %252 = vsyncadd [#allocation4], 4294967168 }
 0x252   :  { %149 = vsyncpa [#allocation3], 1 }
 0x253   :  { %150 = vsyncpa [#allocation6], 1 }
 0x254   :  { %151 = vsyncpa [#allocation4], 1 }

</bundles_post_ra>
